<compile_context>
chip_gen: v7x
topology: tpu7x:2x2x1
jax: 0.10.0
libtpu: 0.0.40
codegen_flags: <defaults>
</compile_context>

<pallas_src>
import functools

import jax
import jax.numpy as jnp
from jax.experimental import pallas as pl
from jax.experimental.pallas import tpu as pltpu

_CORNERS = [(0, 0, 0), (1, 0, 0), (0, 1, 0), (1, 1, 0),
            (0, 0, 1), (1, 0, 1), (0, 1, 1), (1, 1, 1)]


def _trilinear_kernel(lut_ref, x_ref, o_ref, *, dim, dp, tile_pixels):
    TP = tile_pixels
    inv_binsize = (dim - 1) / 1.000001  # constant reciprocal: one multiply, no divide

    # ---- full-slab elementwise prep in f32 --------------------------------
    xf = x_ref[...].astype(jnp.float32) * inv_binsize          # (3, TP)
    idf = jnp.clip(jnp.floor(xf), 0.0, float(dim - 2))         # clamp cell index
    frac = xf - idf                                            # (3, TP)
    idx = idf.astype(jnp.int32)                                # (3, TP)

    r_id, g_id, b_id = idx[0:1, :], idx[1:2, :], idx[2:3, :]   # (1, TP)
    r_d, g_d, b_d = frac[0:1, :], frac[1:2, :], frac[2:3, :]   # (1, TP)

    # ---- per-axis two-hot weight columns ----------------------------------
    # Padded rows (>= dim) stay zero automatically because cell ids <= dim-2.
    iota_p = jax.lax.broadcasted_iota(jnp.int32, (dp, TP), 0)
    iota_b = jax.lax.broadcasted_iota(jnp.int32, (dim, TP), 0)

    r_w = (jnp.where(iota_p == r_id, 1.0 - r_d, 0.0)
           + jnp.where(iota_p == r_id + 1, r_d, 0.0))          # (dp, TP)
    g_w = (jnp.where(iota_p == g_id, 1.0 - g_d, 0.0)
           + jnp.where(iota_p == g_id + 1, g_d, 0.0))          # (dp, TP)
    b_w = (jnp.where(iota_b == b_id, 1.0 - b_d, 0.0)
           + jnp.where(iota_b == b_id + 1, b_d, 0.0))          # (dim, TP)

    # ---- joint r(x)b two-hot weight: rb_w[b*dp + r, p] = b_w[b,p] * r_w[r,p]
    # dp is a multiple of 8, so the reshape is an aligned (free) view.
    rb_w = (b_w[:, None, :] * r_w[None, :, :]).reshape(dim * dp, TP)

    # ---- single MXU contraction over (b, r) --------------------------------
    # lut_ref rows are (c, g) [g padded to dp]; columns are (b, r) [r padded to dp].
    m1 = jnp.dot(lut_ref[...], rb_w,
                 preferred_element_type=jnp.float32)           # (3*dp, TP)

    # ---- tiny per-pixel g contraction on the VPU, one lane-dense store -----
    out = jnp.sum(m1.reshape(3, dp, TP) * g_w[None, :, :], axis=1)   # (3, TP)
    o_ref[...] = out.astype(o_ref.dtype)


def _choose_tile_pixels(hw, dim, dp, *, max_tile=4096, rbw_budget_bytes=10 << 20):
    """Largest lane-dense tile keeping the (dim*dp, TP) f32 joint weight <= budget."""
    budget = rbw_budget_bytes // (4 * dim * dp)
    cap = int(max(128, min(max_tile, budget)))
    cap = (cap // 128) * 128
    if hw <= cap:
        return ((hw + 127) // 128) * 128   # single (padded) tile
    return cap


def trilinear_interpolation(lut, x, *, max_tile_pixels=4096):
    """Mirrors TrilinearInterpolationFunction.forward: returns (lut, output)."""
    B, C, H, W = x.shape
    assert C == 3, "Can only interpolate 3D images!"
    dim = lut.shape[-1]
    dp = ((dim + 7) // 8) * 8
    HW = H * W

    tile = _choose_tile_pixels(HW, dim, dp, max_tile=max_tile_pixels)
    n_tiles = -(-HW // tile)
    if B * n_tiles < 2 and tile > 128:      # keep both megacore TCs busy
        tile = max(128, ((tile // 2) // 128) * 128)
        n_tiles = -(-HW // tile)
    hw_pad = n_tiles * tile

    x_flat = x.reshape(B, 3, HW)
    if hw_pad != HW:
        # zero padding is in-range for the LUT; padded outputs are sliced off below
        x_flat = jnp.pad(x_flat, ((0, 0), (0, 0), (0, hw_pad - HW)))

    # lut[c, b, g, r] (flat idx = r + g*dim + b*dim^2)
    #   -> matrix rows (c, g[padded to dp]); columns (b, r[padded to dp]).
    lut_t = jnp.transpose(lut, (0, 2, 1, 3)).astype(jnp.float32)   # (3, g, b, r)
    lut_t = jnp.pad(lut_t, ((0, 0), (0, dp - dim), (0, 0), (0, dp - dim)))
    lut_mat = lut_t.reshape(3 * dp, dim * dp)

    kernel = functools.partial(_trilinear_kernel, dim=dim, dp=dp, tile_pixels=tile)

    out_flat = pl.pallas_call(
        kernel,
        out_shape=jax.ShapeDtypeStruct((B, 3, hw_pad), x.dtype),
        grid_spec=pltpu.PrefetchScalarGridSpec(
            num_scalar_prefetch=0,
            grid=(B, n_tiles),
            in_specs=[
                # Full LUT matrix; constant block index => DMA'd once.
                pl.BlockSpec((3 * dp, dim * dp), lambda b, t: (0, 0)),
                pl.BlockSpec((pl.Squeezed(), 3, tile), lambda b, t: (b, 0, t)),
            ],
            out_specs=pl.BlockSpec((pl.Squeezed(), 3, tile),
                                   lambda b, t: (b, 0, t)),
        ),
        compiler_params=pltpu.CompilerParams(
            dimension_semantics=("parallel", "parallel"),
            vmem_limit_bytes=48 * 1024 * 1024),
    )(lut_mat, x_flat)

    out = out_flat[:, :, :HW].reshape(B, 3, H, W)
    return lut, out


def _ref_forward(lut, x):
    """Pure-JAX reference of the CUDA trilinear.forward semantics."""
    B, C, H, W = x.shape
    dim = lut.shape[-1]
    binsize = 1.000001 / (dim - 1)
    lut_flat = lut.reshape(3, -1)

    r, g, b = x[:, 0], x[:, 1], x[:, 2]
    rf, gf, bf = r / binsize, g / binsize, b / binsize
    r_id_f, g_id_f, b_id_f = jnp.floor(rf), jnp.floor(gf), jnp.floor(bf)
    r_id, g_id, b_id = (v.astype(jnp.int32) for v in (r_id_f, g_id_f, b_id_f))
    r_d, g_d, b_d = rf - r_id_f, gf - g_id_f, bf - b_id_f

    out = jnp.zeros((3, B, H, W), jnp.float32)
    for dr, dg, db in _CORNERS:
        idx = (r_id + dr) + (g_id + dg) * dim + (b_id + db) * (dim * dim)
        w = ((r_d if dr else 1.0 - r_d)
             * (g_d if dg else 1.0 - g_d)
             * (b_d if db else 1.0 - b_d))
        out = out + w[None] * lut_flat[:, idx]
    return jnp.transpose(out, (1, 0, 2, 3)).astype(x.dtype)


if __name__ == "__main__":
    key = jax.random.PRNGKey(0)
    k_lut, k_x = jax.random.split(key)

    dim = 8                      # small LUT (3, 8, 8, 8) for the test
    B, H, W = 2, 16, 16
    lut = jax.random.uniform(k_lut, (3, dim, dim, dim), dtype=jnp.float32)
    x = jax.random.uniform(k_x, (B, 3, H, W), dtype=jnp.float32)  # pixels in [0, 1)

    lut_out, out = trilinear_interpolation(lut, x)
    out = jax.block_until_ready(out)

    ref = _ref_forward(lut, x)
    assert out.shape == (B, 3, H, W) and out.dtype == x.dtype
    assert jnp.allclose(out, ref, atol=1e-5, rtol=1e-5), "mismatch vs JAX reference"

    print("KERNEL_OK")
</pallas_src>

<mosaic_0001>
module attributes {stable_mosaic.version = 11 : i64} {
  func.func @_trilinear_kernel(%arg0: i32, %arg1: i32, %arg2: memref<24x64xf32, #tpu.memory_space<vmem>>, %arg3: memref<1x3x256xf32, #tpu.memory_space<vmem>>, %arg4: memref<1x3x256xf32, #tpu.memory_space<vmem>>) attributes {dimension_semantics = [#tpu.dimension_semantics<parallel>, #tpu.dimension_semantics<parallel>], iteration_bounds = array<i64: 2, 1>, scalar_prefetch = 0 : i64, scratch_operands = 0 : i64, tpu.core_type = #tpu.core_type<tc>, window_params = [{pipeline_mode = #tpu.pipeline_mode<synchronous>, transform_indices = @transform_0, window_bounds = array<i64: 24, 64>}, {transform_indices = @transform_1, window_bounds = array<i64: 1, 3, 256>}, {transform_indices = @transform_2, window_bounds = array<i64: 1, 3, 256>}]} {
    %c0 = arith.constant 0 : index
    %c0_0 = arith.constant 0 : index
    %c0_1 = arith.constant 0 : index
    %0 = vector.load %arg3[%c0, %c0_0, %c0_1] : memref<1x3x256xf32, #tpu.memory_space<vmem>>, vector<1x3x256xf32>
    %1 = vector.shape_cast %0 : vector<1x3x256xf32> to vector<3x256xf32>
    %cst = arith.constant 6.99999285 : f32
    %2 = vector.broadcast %cst : f32 to vector<3x256xf32>
    %3 = arith.mulf %1, %2 : vector<3x256xf32>
    %4 = math.floor %3 : vector<3x256xf32>
    %cst_2 = arith.constant 0.000000e+00 : f32
    %cst_3 = arith.constant 6.000000e+00 : f32
    %5 = vector.broadcast %cst_2 : f32 to vector<3x256xf32>
    %6 = arith.maximumf %5, %4 : vector<3x256xf32>
    %7 = vector.broadcast %cst_3 : f32 to vector<3x256xf32>
    %8 = arith.minimumf %7, %6 : vector<3x256xf32>
    %9 = arith.subf %3, %8 : vector<3x256xf32>
    %10 = arith.fptosi %8 : vector<3x256xf32> to vector<3x256xi32>
    %11 = vector.extract_strided_slice %10 {offsets = [0, 0], sizes = [1, 256], strides = [1, 1]} : vector<3x256xi32> to vector<1x256xi32>
    %12 = vector.extract_strided_slice %10 {offsets = [1, 0], sizes = [1, 256], strides = [1, 1]} : vector<3x256xi32> to vector<1x256xi32>
    %13 = vector.extract_strided_slice %10 {offsets = [2, 0], sizes = [1, 256], strides = [1, 1]} : vector<3x256xi32> to vector<1x256xi32>
    %14 = vector.extract_strided_slice %9 {offsets = [0, 0], sizes = [1, 256], strides = [1, 1]} : vector<3x256xf32> to vector<1x256xf32>
    %15 = vector.extract_strided_slice %9 {offsets = [1, 0], sizes = [1, 256], strides = [1, 1]} : vector<3x256xf32> to vector<1x256xf32>
    %16 = vector.extract_strided_slice %9 {offsets = [2, 0], sizes = [1, 256], strides = [1, 1]} : vector<3x256xf32> to vector<1x256xf32>
    %17 = tpu.iota {dimensions = array<i32: 0>} : vector<8x256xi32>
    %18 = tpu.iota {dimensions = array<i32: 0>} : vector<8x256xi32>
    %19 = vector.broadcast %11 : vector<1x256xi32> to vector<8x256xi32>
    %20 = arith.cmpi eq, %17, %19 : vector<8x256xi32>
    %cst_4 = arith.constant 1.000000e+00 : f32
    %21 = vector.broadcast %cst_4 : f32 to vector<1x256xf32>
    %22 = arith.subf %21, %14 : vector<1x256xf32>
    %cst_5 = arith.constant 0.000000e+00 : f32
    %23 = vector.shape_cast %22 : vector<1x256xf32> to vector<1x256xf32>
    %24 = vector.broadcast %23 : vector<1x256xf32> to vector<8x256xf32>
    %25 = vector.broadcast %cst_5 : f32 to vector<8x256xf32>
    %26 = arith.select %20, %24, %25 : vector<8x256xi1>, vector<8x256xf32>
    %c1_i32 = arith.constant 1 : i32
    %27 = vector.broadcast %c1_i32 : i32 to vector<1x256xi32>
    %28 = arith.addi %11, %27 : vector<1x256xi32>
    %29 = vector.broadcast %28 : vector<1x256xi32> to vector<8x256xi32>
    %30 = arith.cmpi eq, %17, %29 : vector<8x256xi32>
    %cst_6 = arith.constant 0.000000e+00 : f32
    %31 = vector.shape_cast %14 : vector<1x256xf32> to vector<1x256xf32>
    %32 = vector.broadcast %31 : vector<1x256xf32> to vector<8x256xf32>
    %33 = vector.broadcast %cst_6 : f32 to vector<8x256xf32>
    %34 = arith.select %30, %32, %33 : vector<8x256xi1>, vector<8x256xf32>
    %35 = arith.addf %26, %34 : vector<8x256xf32>
    %36 = vector.broadcast %12 : vector<1x256xi32> to vector<8x256xi32>
    %37 = arith.cmpi eq, %17, %36 : vector<8x256xi32>
    %cst_7 = arith.constant 1.000000e+00 : f32
    %38 = vector.broadcast %cst_7 : f32 to vector<1x256xf32>
    %39 = arith.subf %38, %15 : vector<1x256xf32>
    %cst_8 = arith.constant 0.000000e+00 : f32
    %40 = vector.shape_cast %39 : vector<1x256xf32> to vector<1x256xf32>
    %41 = vector.broadcast %40 : vector<1x256xf32> to vector<8x256xf32>
    %42 = vector.broadcast %cst_8 : f32 to vector<8x256xf32>
    %43 = arith.select %37, %41, %42 : vector<8x256xi1>, vector<8x256xf32>
    %c1_i32_9 = arith.constant 1 : i32
    %44 = vector.broadcast %c1_i32_9 : i32 to vector<1x256xi32>
    %45 = arith.addi %12, %44 : vector<1x256xi32>
    %46 = vector.broadcast %45 : vector<1x256xi32> to vector<8x256xi32>
    %47 = arith.cmpi eq, %17, %46 : vector<8x256xi32>
    %cst_10 = arith.constant 0.000000e+00 : f32
    %48 = vector.shape_cast %15 : vector<1x256xf32> to vector<1x256xf32>
    %49 = vector.broadcast %48 : vector<1x256xf32> to vector<8x256xf32>
    %50 = vector.broadcast %cst_10 : f32 to vector<8x256xf32>
    %51 = arith.select %47, %49, %50 : vector<8x256xi1>, vector<8x256xf32>
    %52 = arith.addf %43, %51 : vector<8x256xf32>
    %53 = vector.broadcast %13 : vector<1x256xi32> to vector<8x256xi32>
    %54 = arith.cmpi eq, %18, %53 : vector<8x256xi32>
    %cst_11 = arith.constant 1.000000e+00 : f32
    %55 = vector.broadcast %cst_11 : f32 to vector<1x256xf32>
    %56 = arith.subf %55, %16 : vector<1x256xf32>
    %cst_12 = arith.constant 0.000000e+00 : f32
    %57 = vector.shape_cast %56 : vector<1x256xf32> to vector<1x256xf32>
    %58 = vector.broadcast %57 : vector<1x256xf32> to vector<8x256xf32>
    %59 = vector.broadcast %cst_12 : f32 to vector<8x256xf32>
    %60 = arith.select %54, %58, %59 : vector<8x256xi1>, vector<8x256xf32>
    %c1_i32_13 = arith.constant 1 : i32
    %61 = vector.broadcast %c1_i32_13 : i32 to vector<1x256xi32>
    %62 = arith.addi %13, %61 : vector<1x256xi32>
    %63 = vector.broadcast %62 : vector<1x256xi32> to vector<8x256xi32>
    %64 = arith.cmpi eq, %18, %63 : vector<8x256xi32>
    %cst_14 = arith.constant 0.000000e+00 : f32
    %65 = vector.shape_cast %16 : vector<1x256xf32> to vector<1x256xf32>
    %66 = vector.broadcast %65 : vector<1x256xf32> to vector<8x256xf32>
    %67 = vector.broadcast %cst_14 : f32 to vector<8x256xf32>
    %68 = arith.select %64, %66, %67 : vector<8x256xi1>, vector<8x256xf32>
    %69 = arith.addf %60, %68 : vector<8x256xf32>
    %70 = vector.shape_cast %69 : vector<8x256xf32> to vector<8x1x256xf32>
    %71 = vector.shape_cast %35 : vector<8x256xf32> to vector<1x8x256xf32>
    %72 = vector.broadcast %70 : vector<8x1x256xf32> to vector<8x8x256xf32>
    %73 = vector.broadcast %71 : vector<1x8x256xf32> to vector<8x8x256xf32>
    %74 = arith.mulf %72, %73 : vector<8x8x256xf32>
    %75 = vector.shape_cast %74 : vector<8x8x256xf32> to vector<64x256xf32>
    %c0_15 = arith.constant 0 : index
    %c0_16 = arith.constant 0 : index
    %76 = vector.load %arg2[%c0_15, %c0_16] : memref<24x64xf32, #tpu.memory_space<vmem>>, vector<24x64xf32>
    %cst_17 = arith.constant dense<0.000000e+00> : vector<24x256xf32>
    %77 = tpu.matmul %76, %75, %cst_17 {dimension_numbers = #tpu.dot_dimension_numbers<[1], [0], [0], [1], [0, 0, 1, 1], [], []>} : vector<24x64xf32>, vector<64x256xf32>, vector<24x256xf32> -> vector<24x256xf32>
    %78 = vector.shape_cast %77 : vector<24x256xf32> to vector<3x8x256xf32>
    %79 = vector.shape_cast %52 : vector<8x256xf32> to vector<1x8x256xf32>
    %80 = vector.broadcast %79 : vector<1x8x256xf32> to vector<3x8x256xf32>
    %81 = arith.mulf %78, %80 : vector<3x8x256xf32>
    %cst_18 = arith.constant dense<0.000000e+00> : vector<3x256xf32>
    %82 = vector.multi_reduction <add>, %81, %cst_18 [1] : vector<3x8x256xf32> to vector<3x256xf32>
    %c0_19 = arith.constant 0 : index
    %c0_20 = arith.constant 0 : index
    %c0_21 = arith.constant 0 : index
    %83 = vector.load %arg4[%c0_19, %c0_20, %c0_21] : memref<1x3x256xf32, #tpu.memory_space<vmem>>, vector<1x3x256xf32>
    %84 = vector.shape_cast %83 : vector<1x3x256xf32> to vector<3x256xf32>
    %85 = vector.shape_cast %82 : vector<3x256xf32> to vector<1x3x256xf32>
    tpu.vector_store %arg4[%c0_19, %c0_20, %c0_21], %85 {strides = array<i32>} : memref<1x3x256xf32, #tpu.memory_space<vmem>>, vector<1x3x256xf32>,
    return
  }
  func.func @transform_0(%arg0: i32, %arg1: i32) -> (i32, i32) {
    %c0_i32 = arith.constant 0 : i32
    %c0_i32_0 = arith.constant 0 : i32
    %c0_i32_1 = arith.constant 0 : i32
    return %c0_i32, %c0_i32_0 : i32, i32
  }
  func.func @transform_1(%arg0: i32, %arg1: i32) -> (i32, i32, i32) {
    %c0_i32 = arith.constant 0 : i32
    %c0_i32_0 = arith.constant 0 : i32
    return %arg0, %c0_i32, %arg1 : i32, i32, i32
  }
  func.func @transform_2(%arg0: i32, %arg1: i32) -> (i32, i32, i32) {
    %c0_i32 = arith.constant 0 : i32
    %c0_i32_0 = arith.constant 0 : i32
    return %arg0, %c0_i32, %arg1 : i32, i32, i32
  }
}

</mosaic_0001>

<bundles_post_ra>
// kernel: tpu_custom_call.1
= control target key start
LH: loop header
LB: loop body
LE: loop exit
PB: predicated region body
PF: predicated region fallthrough
CT: control target
= control target key end

     0   :  { %s933_s9 = smov 0   ;;  %s935_s10 = smov 0   ;;  %s1086_s0 = inlined_call_operand.vmem [shape: f32[24,64], index: 0, kind: input, shape index: {}]   ;;  %s1087_s1 = inlined_call_operand.vmem [shape: f32[2,3,256], index: 1, kind: input, shape index: {}]   ;;  %s1088_s2 = inlined_call_operand.vmem [shape: f32[2,3,256], index: 2, kind: output, shape index: {}]  }
   0x1   :  { %s937_s11 = smov 0  }
   0x2 LB: > { %s24_s12 = sadd.s32 1, %s910_s10  ;;  %p828_p0 = scmp.ge.s32.totalorder %s914_s11, 1  ;;  %s914_s11 = sphi %s937_s11, %s12_s11   ;;  %s910_s10 = sphi %s935_s10, %s1090_s10   ;;  %s906_s9 = sphi %s933_s9, %s1089_s9  }
   0x3   : > { %p26_p1 = scmp.ge.s32.totalorder %s24_s12, 2  ;;  %p133_p2 = scmp.lt.s32.totalorder %s914_s11, 3 }
   0x5   : > { %s1092_s12 = smov (%p26_p1, %s24_s12), 0  ;;  %p134_p3 = pnand %p828_p0, %p133_p2 }
   0x6   : > { %p164_p4 = scmp.lt.s32.totalorder (!%p134_p3), %s906_s9, 1  ;;  %v916_v0 = vmov (!%p134_p3), 0.0   ;;  %v190_v3 = vlaneseq (!%p134_p3)  ;;  %v917_v9 = vmov (!%p134_p3), 1966171168   ;;  %vm581_vm8 = vcmask (!%p134_p3), 523264  }
   0x7   : > { %137 = sbr.rel (%p134_p3) target bundleno = 310 (0x136), region = 28  ;;  %655 = vmatprep.mubr.f32.mxu0 (!%p134_p3), %v916_v0  ;;  %661 = vmatprep.mubr.f32.mxu1 (!%p134_p3), %v916_v0  ;;  %v435_v10 = vunpack.c.l.s4 (!%p134_p3), %v917_v9  ;;  %vm726_vm13 = vcmask (!%p134_p3), 1041409   ;;  %vm728_vm14 = vcmask (!%p134_p3), 1045509   ;;  %vm731_vm15 = vcmask (!%p134_p3), 1042434  }
   0x8   : > { %v961_v6 = vshrl.u32 (!%p134_p3), %v190_v3, 7 }
   0x9   : > { %v436_v19 = vunpack.c.0.s8 (!%p134_p3), %v435_v10 }
   0xa   : > { %v198_v8 = vsub.s32 (!%p134_p3), 4, %v961_v6  ;;  %v354_v13 = vsub.s32 (!%p134_p3), 2, %v961_v6  ;;  %v358_v14 = vsub.s32 (!%p134_p3), 6, %v961_v6  ;;  %v971_v16 = vsub.s32 (!%p134_p3), 0, %v961_v6 }
   0xb   : > { %v439_v55 = vsub.s32 (!%p134_p3), %v436_v19, %v961_v6 }
   0xe   : > { %s1094_s9 = smov (!%p164_p4, %s906_s9), 1 }
   0xf   : > { %s838_s13 = sshll.u32 %s1094_s9, 3 }
  0x10   : > { %s171_s16 = scalar_lea.vmem %s1087_s1, %s838_s13  ;;  %s181_s25 = scalar_lea.vmem %s1088_s2, %s838_s13 }
  0x11   : > { %v183_v1 = vld [vmem:[%s171_s16] sm:$0x77] }
  0x12   : > { %v184_v2 = vmul.f32 6.999993, %v183_v1  ;;  %v1019_v1 = vsub.s32 1, %v961_v6 }
  0x14   : > { %v185_v4 = vfloor.f32 %v184_v2 }
  0x16   : > { %v186_v5 = vmax.f32 %v185_v4, 0.0 }
  0x18   : > { %v187_v7 = vmin.f32 %v186_v5, 6.0 }
  0x1a   : > { %v964_v11 = vsub.f32 %v184_v2, %v187_v7  ;;  %v864_v12 = vtrunc.f32 %v187_v7 }
  0x1c   : > { %v968_v15 = vcvt.f32.s32 %v864_v12  ;;  %v974_v17 = vsub.f32 1.0, %v964_v11  ;;  %v259_v18 = vrot.slane %v964_v11, %v198_v8  ;;  %v411_v22 = vrot.slane %v964_v11, %v354_v13 }
  0x1d   : > { %v415_v23 = vrot.slane %v964_v11, %v358_v14  ;;  %v255_v39 = vrot.slane %v964_v11, %v971_v16 }
  0x1e   : > { %v199_v20 = vrot.slane %v968_v15, %v198_v8  ;;  %v979_v21 = vadd.s32 1, %v968_v15  ;;  %v355_v24 = vrot.slane %v968_v15, %v354_v13  ;;  %v359_v25 = vrot.slane %v968_v15, %v358_v14 }
  0x1f   : > { %v373_v26 = vrot.slane %v974_v17, %v354_v13  ;;  %v377_v27 = vrot.slane %v974_v17, %v358_v14  ;;  %v219_v29 = vrot.slane %v974_v17, %v198_v8  ;;  %v269_v40 = vrot.slane %v259_v18, %v971_v16 }
  0x20   : > { %v207_v28 = vrot.slane %v199_v20, %v971_v16  ;;  %v240_v30 = vrot.slane %v979_v21, %v198_v8  ;;  %v393_v31 = vrot.slane %v979_v21, %v354_v13  ;;  %v363_v32 = vrot.slane %v355_v24, %v354_v13 }
  0x21   : > { %v367_v33 = vrot.slane %v359_v25, %v354_v13  ;;  %v383_v34 = vrot.slane %v373_v26, %v354_v13  ;;  %v387_v35 = vrot.slane %v377_v27, %v354_v13  ;;  %v397_v37 = vrot.slane %v979_v21, %v358_v14 }
  0x22   : > { %v248_v36 = vrot.slane %v240_v30, %v971_v16  ;;  %v401_v38 = vrot.slane %v393_v31, %v354_v13  ;;  %vm368_vm0 = vcmp.eq.s32.totalorder %v961_v6, %v363_v32  ;;  %v421_v41 = vrot.slane %v411_v22, %v354_v13 }
  0x23   : > { %vm369_vm1 = vcmp.eq.s32.totalorder %v961_v6, %v367_v33  ;;  %vm209_vm2 = vcmp.eq.s32.totalorder %v961_v6, %v207_v28  ;;  %v229_v42 = vrot.slane %v219_v29, %v971_v16  ;;  %v388_v43 = vsel %vm368_vm0, %v383_v34, 0.0 }
  0x24   : > { %v405_v44 = vrot.slane %v397_v37, %v354_v13  ;;  %v389_v45 = vsel %vm369_vm1, %v387_v35, 0.0  ;;  %vm406_vm3 = vcmp.eq.s32.totalorder %v961_v6, %v401_v38  ;;  %v425_v46 = vrot.slane %v415_v23, %v354_v13 }
  0x25   : > { %v195_v47 = vrot.slane %v968_v15, %v971_v16  ;;  %vm250_vm4 = vcmp.eq.s32.totalorder %v961_v6, %v248_v36  ;;  %v426_v48 = vsel %vm406_vm3, %v421_v41, 0.0  ;;  %v215_v49 = vrot.slane %v974_v17, %v971_v16 }
  0x26   : > { %vm407_vm5 = vcmp.eq.s32.totalorder %v961_v6, %v405_v44  ;;  %v428_v51 = vadd.f32 %v426_v48, %v388_v43  ;;  %v236_v53 = vrot.slane %v979_v21, %v971_v16  ;;  %v265_v57 = vrot.slane %v255_v39, %v971_v16 }
  0x27   : > { %v427_v50 = vsel %vm407_vm5, %v425_v46, 0.0  ;;  %v203_v52 = vrot.slane %v195_v47, %v971_v16  ;;  %v225_v56 = vrot.slane %v215_v49, %v971_v16  ;;  %v231_v58 = vsel %vm209_vm2, %v229_v42, 0.0 }
  0x28   : > { %v429_v54 = vadd.f32 %v427_v50, %v389_v45  ;;  %v244_v59 = vrot.slane %v236_v53, %v971_v16  ;;  %v271_v60 = vsel %vm250_vm4, %v269_v40, 0.0  ;;  %vm733_vm0 = vcmask 1046534  }
  0x29   : > { %vm208_vm6 = vcmp.eq.s32.totalorder %v961_v6, %v203_v52  ;;  %v273_v5 = vadd.f32 %v271_v60, %v231_v58 }
  0x2a   : > { %v432_v61 = vcombine.low %v428_v51, %v429_v54  ;;  %v230_v62 = vsel %vm208_vm6, %v225_v56, 0.0  ;;  %v433_v63 = vcombine.high %v428_v51, %v429_v54  ;;  %vm249_vm7 = vcmp.eq.s32.totalorder %v961_v6, %v244_v59 }
  0x2b   : > { %v270_v3 = vsel %vm249_vm7, %v265_v57, 0.0 }
  0x2c   : > { %v440_v2 = vrot.slane %v432_v61, %v439_v55  ;;  %v447_v4 = vrot.slane %v433_v63, %v439_v55  ;;  %v272_v7 = vadd.f32 %v270_v3, %v230_v62  ;;  %v579_v63 = vld [vmem:[%s1086_s0 + $0x8] sm:$0xff]  ;;  %v280_v3 = vsub.s32 5, %v961_v6 }
  0x2e   : > { %v448_v8 = vcombine.high %v440_v2, %v440_v2  ;;  %v456_v9 = vrot.slane %v440_v2, %v439_v55  ;;  %v449_v10 = vcombine.high %v447_v4, %v447_v4  ;;  %v463_v12 = vrot.slane %v447_v4, %v439_v55  ;;  %v580_v2 = vld [vmem:[%s1086_s0 + $0x10] sm:$0xff] }
  0x2f   : > { %v277_v4 = vrot.slane %v968_v15, %v1019_v1 }
  0x30   : > { %v470_v13 = vrot.slane %v448_v8, %v439_v55  ;;  %v489_v14 = vrot.slane %v456_v9, %v1019_v1  ;;  %v485_v18 = vrot.slane %v456_v9, %v971_v16  ;;  %v478_v19 = vcombine.high %v456_v9, %v456_v9 }
  0x31   : > { %v477_v20 = vrot.slane %v449_v10, %v439_v55  ;;  %v521_v22 = vrot.slane %v463_v12, %v1019_v1  ;;  %v517_v23 = vrot.slane %v463_v12, %v971_v16  ;;  %v479_v35 = vcombine.high %v463_v12, %v463_v12 }
  0x32   : > { %v497_v24 = vrot.slane %v470_v13, %v1019_v1  ;;  %v563_v25 = vmul.f32 %v489_v14, %v273_v5  ;;  %v493_v26 = vrot.slane %v470_v13, %v971_v16  ;;  %v562_v27 = vmul.f32 %v485_v18, %v272_v7 }
  0x33   : > { %v480_v28 = vcombine.high %v470_v13, %v470_v13  ;;  %v505_v29 = vrot.slane %v478_v19, %v1019_v1  ;;  %v501_v30 = vrot.slane %v478_v19, %v971_v16  ;;  %v529_v31 = vrot.slane %v477_v20, %v1019_v1 }
  0x34   : > { %v565_v32 = vmul.f32 %v497_v24, %v273_v5  ;;  %v564_v33 = vmul.f32 %v493_v26, %v272_v7  ;;  %v525_v34 = vrot.slane %v477_v20, %v971_v16  ;;  %v571_v42 = vmul.f32 %v521_v22, %v273_v5 }
  0x35   : > { %v513_v36 = vrot.slane %v480_v28, %v1019_v1  ;;  %v567_v37 = vmul.f32 %v505_v29, %v273_v5  ;;  %v509_v38 = vrot.slane %v480_v28, %v971_v16  ;;  %v566_v39 = vmul.f32 %v501_v30, %v272_v7 }
  0x36   : > { %v840_v40 = vpack.c.bf16 %v565_v32, %v563_v25  ;;  %v842_v41 = vpack.c.bf16 %v564_v33, %v562_v27  ;;  %v573_v43 = vmul.f32 %v529_v31, %v273_v5  ;;  %v481_v46 = vcombine.high %v477_v20, %v477_v20 }
  0x37   : > { %v569_v44 = vmul.f32 %v513_v36, %v273_v5  ;;  %v568_v45 = vmul.f32 %v509_v38, %v272_v7  ;;  %v570_v47 = vmul.f32 %v517_v23, %v272_v7  ;;  %v572_v48 = vmul.f32 %v525_v34, %v272_v7 }
  0x38   : > { %841 = vmatprep.subr.bf16.mxu0 %v840_v40  ;;  %856 = vmatprep.subr.bf16.mxu1 %v840_v40  ;;  %v537_v49 = vrot.slane %v479_v35, %v1019_v1  ;;  %v533_v52 = vrot.slane %v479_v35, %v971_v16  ;;  %v848_v53 = vpack.c.bf16 %v573_v43, %v571_v42 }
  0x39   : > { %843 = vmatpush1.bf16.msra.mxu0 %v842_v41  ;;  %860 = vmatpush1.bf16.msra.mxu1 %v842_v41  ;;  %v844_v50 = vpack.c.bf16 %v569_v44, %v567_v37  ;;  %v846_v51 = vpack.c.bf16 %v568_v45, %v566_v39  ;;  %v545_v54 = vrot.slane %v481_v46, %v1019_v1 }
  0x3a   : > { %v575_v55 = vmul.f32 %v537_v49, %v273_v5  ;;  %v541_v56 = vrot.slane %v481_v46, %v971_v16  ;;  %v850_v58 = vpack.c.bf16 %v572_v48, %v570_v47  ;;  %v574_v59 = vmul.f32 %v533_v52, %v272_v7  ;;  %v578_v16 = vld [vmem:[%s1086_s0] sm:$0xff] }
  0x3b   : > { %845 = vmatprep.subr.bf16.mxu0 %v844_v50  ;;  %857 = vmatprep.subr.bf16.mxu1 %v844_v50  ;;  %v577_v57 = vmul.f32 %v545_v54, %v273_v5  ;;  %v315_v5 = vrot.slane %v979_v21, %v1019_v1  ;;  %v319_v8 = vrot.slane %v979_v21, %v280_v3 }
  0x3c   : > { %v576_v60 = vmul.f32 %v541_v56, %v272_v7  ;;  %v281_v7 = vrot.slane %v968_v15, %v280_v3  ;;  %v333_v9 = vrot.slane %v964_v11, %v1019_v1  ;;  %v285_v10 = vrot.slane %v277_v4, %v1019_v1 }
  0x3d   : > { %847 = vmatpush1.bf16.msra.mxu0 %v846_v51  ;;  %861 = vmatpush1.bf16.msra.mxu1 %v846_v51  ;;  %v852_v61 = vpack.c.bf16 %v577_v57, %v575_v55  ;;  %v323_v12 = vrot.slane %v315_v5, %v1019_v1  ;;  %v299_v13 = vrot.slane %v974_v17, %v280_v3 }
  0x3e   : > { %849 = vmatprep.subr.bf16.mxu0 %v848_v53  ;;  %858 = vmatprep.subr.bf16.mxu1 %v848_v53  ;;  %v854_v62 = vpack.c.bf16 %v576_v60, %v574_v59  ;;  %v337_v14 = vrot.slane %v964_v11, %v280_v3  ;;  %v289_v18 = vrot.slane %v281_v7, %v1019_v1 }
  0x3f   : > { %v327_v15 = vrot.slane %v319_v8, %v1019_v1  ;;  %v343_v19 = vrot.slane %v333_v9, %v1019_v1  ;;  %vm290_vm9 = vcmp.eq.s32.totalorder %v961_v6, %v285_v10  ;;  %vm328_vm10 = vcmp.eq.s32.totalorder %v961_v6, %v323_v12 }
  0x40   : > { %v309_v20 = vrot.slane %v299_v13, %v1019_v1  ;;  %v347_v22 = vrot.slane %v337_v14, %v1019_v1  ;;  %vm291_vm11 = vcmp.eq.s32.totalorder %v961_v6, %v289_v18 }
  0x41   : > { %851 = vmatpush1.bf16.msra.mxu0 %v850_v58  ;;  %862 = vmatpush1.bf16.msra.mxu1 %v850_v58  ;;  %vm329_vm12 = vcmp.eq.s32.totalorder %v961_v6, %v327_v15 }
  0x42   : > { %853 = vmatprep.subr.bf16.mxu0 %v852_v61  ;;  %859 = vmatprep.subr.bf16.mxu1 %v852_v61  ;;  %v311_v23 = vsel %vm291_vm11, %v309_v20, 0.0  ;;  %v349_v24 = vsel %vm329_vm12, %v347_v22, 0.0 }
  0x43   : > { %v351_v26 = vadd.f32 %v349_v24, %v311_v23 }
  0x45   : > { %855 = vmatpush1.bf16.msra.mxu0 %v854_v62  ;;  %863 = vmatpush1.bf16.msra.mxu1 %v854_v62 }
  0x48   : > { %833 = vmatmul.mubr.msk.f32.vlgmr.msra.gmra.mrb[0].mxu0 %vm581_vm8, %v578_v16  ;;  %834 = vmatmul.mubr.msk.f32.vlgmr.msra.gmra.mrb[0].mxu1 %vm581_vm8, %v579_v63 }
  0x49   : > { %667 = vmatprep.mubr.f32.mxu1 %v916_v0  ;;  %v295_v0 = vrot.slane %v974_v17, %v1019_v1  ;;  %v348_v17 = vsel %vm328_vm10, %v343_v19, 0.0 }
  0x4b   : > { %v305_v21 = vrot.slane %v295_v0, %v1019_v1 }
  0x4c   : > { %835 = vmatmul.mubr.msk.f32.gmra.mrb[2].mxu1 %vm581_vm8, %v580_v2 }
  0x4d   : > { %v310_v11 = vsel %vm290_vm9, %v305_v21, 0.0 }
  0x4e   : > { %v350_v25 = vadd.f32 %v348_v17, %v310_v11 }
 0x11b   : > { %v657_v27 = vpop.f32.mrb[0].mxu0  ;;  %v663_v28 = vpop.f32.mrb[0].mxu1 }
 0x11c   : > { %v674_v29 = vmul.f32 %v657_v27, %v350_v25  ;;  %v676_v30 = vmul.f32 %v663_v28, %v350_v25  ;;  %v659_v31 = vpop.f32.mrb[1].mxu0  ;;  %v665_v32 = vpop.f32.mrb[1].mxu1 }
 0x11d   : > { %v675_v33 = vmul.f32 %v659_v31, %v351_v26  ;;  %v677_v34 = vmul.f32 %v665_v32, %v351_v26 }
 0x11e   : > { %v680_v35 = vrot.slane %v674_v29, 4  ;;  %v692_v1 = vrot.slane %v676_v30, 4 }
 0x11f   : > { %v686_v36 = vrot.slane %v675_v33, 4  ;;  %v698_v37 = vrot.slane %v677_v34, 4  ;;  %v669_v38 = vpop.f32.mrb[2].mxu1 }
 0x120   : > { %v681_v6 = vadd.f32 %v680_v35, %v674_v29  ;;  %v693_v39 = vadd.f32 %v692_v1, %v676_v30  ;;  %v678_v40 = vmul.f32 %v669_v38, %v350_v25  ;;  %v671_v41 = vpop.f32.mrb[3].mxu1 }
 0x121   : > { %v687_v42 = vadd.f32 %v686_v36, %v675_v33  ;;  %v699_v43 = vadd.f32 %v698_v37, %v677_v34  ;;  %v679_v44 = vmul.f32 %v671_v41, %v351_v26 }
 0x122   : > { %v682_v45 = vrot.slane %v681_v6, 2  ;;  %v694_v46 = vrot.slane %v693_v39, 2  ;;  %v704_v47 = vrot.slane %v678_v40, 4 }
 0x123   : > { %v688_v48 = vrot.slane %v687_v42, 2  ;;  %v700_v49 = vrot.slane %v699_v43, 2  ;;  %v710_v50 = vrot.slane %v679_v44, 4 }
 0x124   : > { %v683_v51 = vadd.f32 %v682_v45, %v681_v6  ;;  %v695_v52 = vadd.f32 %v694_v46, %v693_v39  ;;  %v705_v53 = vadd.f32 %v704_v47, %v678_v40 }
 0x125   : > { %v689_v54 = vadd.f32 %v688_v48, %v687_v42  ;;  %v701_v55 = vadd.f32 %v700_v49, %v699_v43  ;;  %v711_v56 = vadd.f32 %v710_v50, %v679_v44 }
 0x126   : > { %v684_v57 = vrot.slane %v683_v51, 1  ;;  %v696_v58 = vrot.slane %v695_v52, 1  ;;  %v706_v59 = vrot.slane %v705_v53, 2 }
 0x127   : > { %v690_v60 = vrot.slane %v689_v54, 1  ;;  %v702_v61 = vrot.slane %v701_v55, 1  ;;  %v712_v62 = vrot.slane %v711_v56, 2 }
 0x128   : > { %v685_v16 = vadd.f32 %v684_v57, %v683_v51  ;;  %v697_v63 = vadd.f32 %v696_v58, %v695_v52  ;;  %v707_v2 = vadd.f32 %v706_v59, %v705_v53 }
 0x129   : > { %v691_v3 = vadd.f32 %v690_v60, %v689_v54  ;;  %v703_v4 = vadd.f32 %v702_v61, %v701_v55  ;;  %v713_v5 = vadd.f32 %v712_v62, %v711_v56 }
 0x12a   : > { %v708_v7 = vrot.slane %v707_v2, 1 }
 0x12b   : > { %v722_v8 = vcombine.low %v685_v16, %v691_v3  ;;  %v723_v0 = vcombine.low %v697_v63, %v703_v4  ;;  %v714_v9 = vrot.slane %v713_v5, 1 }
 0x12c   : > { %v709_v10 = vadd.f32 %v708_v7, %v707_v2 }
 0x12d   : > { %v725_v12 = vrot.slane %v723_v0, 7  ;;  %v715_v13 = vadd.f32 %v714_v9, %v713_v5 }
 0x12f   : > { %v727_v14 = vsel %vm726_vm13, %v725_v12, %v722_v8  ;;  %v724_v18 = vcombine.low %v709_v10, %v715_v13 }
 0x130   : > { %v729_v15 = vsel %vm728_vm14, %v725_v12, %v727_v14 }
 0x131   : > { %v730_v21 = vrot.slane %v724_v18, 6 }
 0x133   : > { %v732_v19 = vsel %vm731_vm15, %v730_v21, %v729_v15 }
 0x134   : > { %v734_v20 = vsel %vm733_vm0, %v730_v21, %v732_v19 }
 0x135   : > { %736 = vst [vmem:[%s181_s25] sm:$0x77] %v734_v20 }
 0x136 PF: > { %s12_s11 = sadd.s32 1, %s914_s11   ;;  %s1089_s9 = smov %s910_s10 }
 0x137   : > { %p9_p5 = scmp.ge.s32.totalorder %s12_s11, 4   ;;  %s1090_s10 = smov %s1092_s12 }
 0x139   :  { %11 = sbr.rel (!%p9_p5) target bundleno = 2 (0x2), region = 58 }

</bundles_post_ra>
